<compile_context>
chip_gen: v6e
topology: v6e:2x2x1
jax: 0.10.0
libtpu: 0.0.40
codegen_flags: <defaults>
</compile_context>

<pallas_src>
import jax
import jax.numpy as jnp
from jax.experimental import pallas as pl
from jax.experimental.pallas import tpu as pltpu


# ----------------------------------------------------------------------------
# Pallas kernel: fused 2x (matmul + tanh) + head.  Normalization & scaling are
# pre-folded into the weights, so this is matmul/EUP work only.
# ----------------------------------------------------------------------------
def actor_fwd_kernel(x_ref, w1_ref, b1_ref, w2_ref, b2_ref, wa_ref, ba_ref,
                     out_ref):
    # hidden layer 0: tanh(x @ W1' + b1')   (MXU matmul, f32 accumulation)
    h = jnp.tanh(
        jnp.dot(x_ref[...], w1_ref[...], preferred_element_type=jnp.float32)
        + b1_ref[...]
    )
    # hidden layer 1: tanh(h @ W2 + b2)
    h = jnp.tanh(
        jnp.dot(h, w2_ref[...], preferred_element_type=jnp.float32)
        + b2_ref[...]
    )
    # action head (scale already folded into Wa'/ba')
    out_ref[...] = (
        jnp.dot(h, wa_ref[...], preferred_element_type=jnp.float32)
        + ba_ref[...]
    ).astype(out_ref.dtype)


# ----------------------------------------------------------------------------
# Host-side parameter folding (one-time transform; preserves forward math)
# ----------------------------------------------------------------------------
def fold_params(p):
    inv_std = 1.0 / p["std"]                            # (1, S)
    w1f = p["w1"] * inv_std.T                           # (S, H1), row-scaled
    b1f = p["b1"] - (p["mean"] * inv_std) @ p["w1"]     # (1, H1)
    waf = p["wa"] * p["scale"]                          # (H2, A), col-scaled
    baf = p["ba"] * p["scale"]                          # (1, A)
    return (w1f.astype(jnp.float32), b1f.astype(jnp.float32),
            p["w2"].astype(jnp.float32), p["b2"].astype(jnp.float32),
            waf.astype(jnp.float32), baf.astype(jnp.float32))


def _round_up(x, m):
    return ((x + m - 1) // m) * m


def _pick_batch_tile(B, max_tile=1024):
    # Largest tile (multiple of 8, capped at max_tile) that still leaves at
    # least 2 grid steps when B allows it -> both v7x TensorCores get work.
    tile = _round_up(max(1, pl.cdiv(B, 2)), 8)
    return max(8, min(max_tile, tile))


# ----------------------------------------------------------------------------
# Wrapper: tiles over the (padded) batch dimension; params are replicated.
# ----------------------------------------------------------------------------
def actor_forward(x, params, *, batch_tile=None):
    B, S = x.shape
    H1 = params["w1"].shape[1]
    H2 = params["w2"].shape[1]
    A = params["wa"].shape[1]

    if batch_tile is None:
        batch_tile = _pick_batch_tile(B)

    # pad batch to a multiple of the tile (pad rows are dropped after the call)
    Bp = _round_up(B, batch_tile)
    if Bp != B:
        x = jnp.pad(x, ((0, Bp - B), (0, 0)))

    w1f, b1f, w2, b2, waf, baf = fold_params(params)

    rep = lambda shape: pl.BlockSpec(shape, lambda i: (0, 0))  # replicated param

    out = pl.pallas_call(
        actor_fwd_kernel,
        out_shape=jax.ShapeDtypeStruct((Bp, A), jnp.float32),
        grid=(Bp // batch_tile,),
        in_specs=[
            pl.BlockSpec((batch_tile, S), lambda i: (i, 0)),   # x
            rep((S, H1)),                                      # W1'
            rep((1, H1)),                                      # b1'
            rep((H1, H2)),                                     # W2
            rep((1, H2)),                                      # b2
            rep((H2, A)),                                      # Wa'
            rep((1, A)),                                       # ba'
        ],
        out_specs=pl.BlockSpec((batch_tile, A), lambda i: (i, 0)),
        compiler_params=pltpu.CompilerParams(
            dimension_semantics=("parallel",)
        ),
    )(x, w1f, b1f, w2, b2, waf, baf)

    return out[:B]


# ----------------------------------------------------------------------------
# Deterministic parameter construction (mirrors Actor.__init__)
# ----------------------------------------------------------------------------
def orthogonal(key, out_dim, in_dim, gain=1.0):
    """Orthogonal init (QR of a Gaussian), matching nn.init.orthogonal_.
    Returned as (in_dim, out_dim) so the kernel computes x @ W."""
    a = jax.random.normal(key, (max(out_dim, in_dim), min(out_dim, in_dim)),
                          dtype=jnp.float32)
    q, r = jnp.linalg.qr(a)
    q = q * jnp.sign(jnp.diag(r))
    if out_dim < in_dim:
        w = q.T                              # (out, in)
    else:
        w = q[:out_dim, :in_dim]             # (out, in)
    return (gain * w).T.astype(jnp.float32)  # -> (in, out)


def build_actor_params(key, s_dim, a_dim, hidden, a_low, a_high):
    k1, k2, k3 = jax.random.split(key, 3)
    h1, h2 = hidden

    # Normalizer stats (non-trivial deterministic values, as if set_mean_std)
    mean = 0.1 * jnp.arange(s_dim, dtype=jnp.float32).reshape(1, s_dim)
    std = 1.0 + 0.05 * jnp.arange(s_dim, dtype=jnp.float32).reshape(1, s_dim)

    return {
        "mean": mean,
        "std": std,
        "w1": orthogonal(k1, h1, s_dim, gain=1.0),    # (s_dim, h1)
        "b1": jnp.zeros((1, h1), jnp.float32),
        "w2": orthogonal(k2, h2, h1, gain=1.0),       # (h1, h2)
        "b2": jnp.zeros((1, h2), jnp.float32),
        "wa": orthogonal(k3, a_dim, h2, gain=0.001),  # (h2, a_dim)
        "ba": jnp.zeros((1, a_dim), jnp.float32),
        "scale": ((a_high - a_low) / 2.0).reshape(1, a_dim).astype(jnp.float32),
    }


def actor_forward_ref(x, p):
    """Pure-JAX reference of Actor.forward (original, un-folded math)."""
    h = (x - p["mean"]) / p["std"]
    h = jnp.tanh(h @ p["w1"] + p["b1"])
    h = jnp.tanh(h @ p["w2"] + p["b2"])
    return (h @ p["wa"] + p["ba"]) * p["scale"]


# ----------------------------------------------------------------------------
if __name__ == "__main__":
    # small shapes consistent with the module: s_dim=32, hidden=[64, 32], a_dim=8
    B, S, H1, H2, A = 256, 32, 64, 32, 8

    key = jax.random.PRNGKey(0)
    kx, kp = jax.random.split(key)

    a_low = -jnp.ones((A,), jnp.float32)
    a_high = 2.0 * jnp.ones((A,), jnp.float32)

    params = build_actor_params(kp, S, A, (H1, H2), a_low, a_high)
    x = jax.random.normal(kx, (B, S), dtype=jnp.float32)

    out = actor_forward(x, params)          # auto tile -> (128 rows, grid=2)
    out = jax.block_until_ready(out)

    ref = actor_forward_ref(x, params)
    assert out.shape == (B, A)
    # tolerance covers MXU matmul precision + the (mathematically exact)
    # host-side re-association from folding mean/std/scale into the weights
    assert jnp.allclose(out, ref, atol=2e-4, rtol=2e-3), (
        f"max err {jnp.max(jnp.abs(out - ref))}"
    )
    print("KERNEL_OK")
</pallas_src>

<mosaic_0001>
module attributes {stable_mosaic.version = 11 : i64} {
  func.func @actor_fwd_kernel(%arg0: i32, %arg1: memref<128x32xf32, #tpu.memory_space<vmem>>, %arg2: memref<32x64xf32, #tpu.memory_space<vmem>>, %arg3: memref<1x64xf32, #tpu.memory_space<vmem>>, %arg4: memref<64x32xf32, #tpu.memory_space<vmem>>, %arg5: memref<1x32xf32, #tpu.memory_space<vmem>>, %arg6: memref<32x8xf32, #tpu.memory_space<vmem>>, %arg7: memref<1x8xf32, #tpu.memory_space<vmem>>, %arg8: memref<128x8xf32, #tpu.memory_space<vmem>>) attributes {dimension_semantics = [#tpu.dimension_semantics<parallel>], iteration_bounds = array<i64: 2>, scalar_prefetch = 0 : i64, scratch_operands = 0 : i64, tpu.core_type = #tpu.core_type<tc>, window_params = [{transform_indices = @transform_0, window_bounds = array<i64: 128, 32>}, {pipeline_mode = #tpu.pipeline_mode<synchronous>, transform_indices = @transform_1, window_bounds = array<i64: 32, 64>}, {pipeline_mode = #tpu.pipeline_mode<synchronous>, transform_indices = @transform_2, window_bounds = array<i64: 1, 64>}, {pipeline_mode = #tpu.pipeline_mode<synchronous>, transform_indices = @transform_3, window_bounds = array<i64: 64, 32>}, {pipeline_mode = #tpu.pipeline_mode<synchronous>, transform_indices = @transform_4, window_bounds = array<i64: 1, 32>}, {pipeline_mode = #tpu.pipeline_mode<synchronous>, transform_indices = @transform_5, window_bounds = array<i64: 32, 8>}, {pipeline_mode = #tpu.pipeline_mode<synchronous>, transform_indices = @transform_6, window_bounds = array<i64: 1, 8>}, {transform_indices = @transform_7, window_bounds = array<i64: 128, 8>}]} {
    %c0 = arith.constant 0 : index
    %c0_0 = arith.constant 0 : index
    %0 = vector.load %arg1[%c0, %c0_0] : memref<128x32xf32, #tpu.memory_space<vmem>>, vector<128x32xf32>
    %c0_1 = arith.constant 0 : index
    %c0_2 = arith.constant 0 : index
    %1 = vector.load %arg2[%c0_1, %c0_2] : memref<32x64xf32, #tpu.memory_space<vmem>>, vector<32x64xf32>
    %cst = arith.constant dense<0.000000e+00> : vector<128x64xf32>
    %2 = tpu.matmul %0, %1, %cst {dimension_numbers = #tpu.dot_dimension_numbers<[1], [0], [0], [1], [0, 0, 1, 1], [], []>} : vector<128x32xf32>, vector<32x64xf32>, vector<128x64xf32> -> vector<128x64xf32>
    %c0_3 = arith.constant 0 : index
    %c0_4 = arith.constant 0 : index
    %3 = vector.load %arg3[%c0_3, %c0_4] : memref<1x64xf32, #tpu.memory_space<vmem>>, vector<1x64xf32>
    %4 = vector.broadcast %3 : vector<1x64xf32> to vector<128x64xf32>
    %5 = arith.addf %2, %4 : vector<128x64xf32>
    %6 = math.tanh %5 : vector<128x64xf32>
    %c0_5 = arith.constant 0 : index
    %c0_6 = arith.constant 0 : index
    %7 = vector.load %arg4[%c0_5, %c0_6] : memref<64x32xf32, #tpu.memory_space<vmem>>, vector<64x32xf32>
    %cst_7 = arith.constant dense<0.000000e+00> : vector<128x32xf32>
    %8 = tpu.matmul %6, %7, %cst_7 {dimension_numbers = #tpu.dot_dimension_numbers<[1], [0], [0], [1], [0, 0, 1, 1], [], []>} : vector<128x64xf32>, vector<64x32xf32>, vector<128x32xf32> -> vector<128x32xf32>
    %c0_8 = arith.constant 0 : index
    %c0_9 = arith.constant 0 : index
    %9 = vector.load %arg5[%c0_8, %c0_9] : memref<1x32xf32, #tpu.memory_space<vmem>>, vector<1x32xf32>
    %10 = vector.broadcast %9 : vector<1x32xf32> to vector<128x32xf32>
    %11 = arith.addf %8, %10 : vector<128x32xf32>
    %12 = math.tanh %11 : vector<128x32xf32>
    %c0_10 = arith.constant 0 : index
    %c0_11 = arith.constant 0 : index
    %13 = vector.load %arg6[%c0_10, %c0_11] : memref<32x8xf32, #tpu.memory_space<vmem>>, vector<32x8xf32>
    %cst_12 = arith.constant dense<0.000000e+00> : vector<128x8xf32>
    %14 = tpu.matmul %12, %13, %cst_12 {dimension_numbers = #tpu.dot_dimension_numbers<[1], [0], [0], [1], [0, 0, 1, 1], [], []>} : vector<128x32xf32>, vector<32x8xf32>, vector<128x8xf32> -> vector<128x8xf32>
    %c0_13 = arith.constant 0 : index
    %c0_14 = arith.constant 0 : index
    %15 = vector.load %arg7[%c0_13, %c0_14] : memref<1x8xf32, #tpu.memory_space<vmem>>, vector<1x8xf32>
    %16 = vector.broadcast %15 : vector<1x8xf32> to vector<128x8xf32>
    %17 = arith.addf %14, %16 : vector<128x8xf32>
    %c0_15 = arith.constant 0 : index
    %c0_16 = arith.constant 0 : index
    %18 = vector.load %arg8[%c0_15, %c0_16] : memref<128x8xf32, #tpu.memory_space<vmem>>, vector<128x8xf32>
    tpu.vector_store %arg8[%c0_15, %c0_16], %17 {strides = array<i32>} : memref<128x8xf32, #tpu.memory_space<vmem>>, vector<128x8xf32>,
    return
  }
  func.func @transform_0(%arg0: i32) -> (i32, i32) {
    %c0_i32 = arith.constant 0 : i32
    %c0_i32_0 = arith.constant 0 : i32
    return %arg0, %c0_i32 : i32, i32
  }
  func.func @transform_1(%arg0: i32) -> (i32, i32) {
    %c0_i32 = arith.constant 0 : i32
    %c0_i32_0 = arith.constant 0 : i32
    %c0_i32_1 = arith.constant 0 : i32
    return %c0_i32, %c0_i32_0 : i32, i32
  }
  func.func @transform_2(%arg0: i32) -> (i32, i32) {
    %c0_i32 = arith.constant 0 : i32
    %c0_i32_0 = arith.constant 0 : i32
    %c0_i32_1 = arith.constant 0 : i32
    return %c0_i32, %c0_i32_0 : i32, i32
  }
  func.func @transform_3(%arg0: i32) -> (i32, i32) {
    %c0_i32 = arith.constant 0 : i32
    %c0_i32_0 = arith.constant 0 : i32
    %c0_i32_1 = arith.constant 0 : i32
    return %c0_i32, %c0_i32_0 : i32, i32
  }
  func.func @transform_4(%arg0: i32) -> (i32, i32) {
    %c0_i32 = arith.constant 0 : i32
    %c0_i32_0 = arith.constant 0 : i32
    %c0_i32_1 = arith.constant 0 : i32
    return %c0_i32, %c0_i32_0 : i32, i32
  }
  func.func @transform_5(%arg0: i32) -> (i32, i32) {
    %c0_i32 = arith.constant 0 : i32
    %c0_i32_0 = arith.constant 0 : i32
    %c0_i32_1 = arith.constant 0 : i32
    return %c0_i32, %c0_i32_0 : i32, i32
  }
  func.func @transform_6(%arg0: i32) -> (i32, i32) {
    %c0_i32 = arith.constant 0 : i32
    %c0_i32_0 = arith.constant 0 : i32
    %c0_i32_1 = arith.constant 0 : i32
    return %c0_i32, %c0_i32_0 : i32, i32
  }
  func.func @transform_7(%arg0: i32) -> (i32, i32) {
    %c0_i32 = arith.constant 0 : i32
    %c0_i32_0 = arith.constant 0 : i32
    return %arg0, %c0_i32 : i32, i32
  }
}

</mosaic_0001>

<bundles_post_ra>
// kernel: tpu_custom_call.1
= control target key start
LH: loop header
LB: loop body
LE: loop exit
PB: predicated region body
PF: predicated region fallthrough
CT: control target
= control target key end

     0   :  { %s1379_s24 = smov 0   ;;  %s1560_s0 = inlined_call_operand.vmem [shape: f32[256,32], index: 0, kind: input, shape index: {}]   ;;  %s1561_s1 = inlined_call_operand.vmem [shape: f32[32,64], index: 1, kind: input, shape index: {}]   ;;  %s1562_s2 = inlined_call_operand.vmem [shape: f32[1,64], index: 2, kind: input, shape index: {}]   ;;  %s1563_s3 = inlined_call_operand.vmem [shape: f32[64,32], index: 3, kind: input, shape index: {}]   ;;  %s1564_s4 = inlined_call_operand.vmem [shape: f32[1,32], index: 4, kind: input, shape index: {}]   ;;  %s1565_s5 = inlined_call_operand.vmem [shape: f32[32,8], index: 5, kind: input, shape index: {}]   ;;  %s1566_s6 = inlined_call_operand.vmem [shape: f32[1,8], index: 6, kind: input, shape index: {}]   ;;  %s1567_s7 = inlined_call_operand.vmem [shape: f32[256,8], index: 7, kind: output, shape index: {}]  }
   0x1 LB: > { %s1021_s25 = sadd.s32 4294967295, %s1337_s24   ;;  %p1025_p0 = scmp.ge.s32.totalorder %s1337_s24, 1  ;;  %s1337_s24 = sphi %s1379_s24, %s17_s24  }
   0x2   : > { %p238_p1 = scmp.lt.s32.totalorder %s1337_s24, 3 }
   0x4   : > { %p239_p2 = pnand %p1025_p0, %p238_p1 }
   0x5   : > { %s1026_s30 = sshll.u32 (!%p239_p2), %s1021_s25, 4 }
   0x6   : > { %242 = sbr.rel (%p239_p2) target bundleno = 670 (0x29e), region = 48  ;;  %p271_p3 = scmp.lt.s32.totalorder (!%p239_p2), %s1026_s30, 31 }
   0xb   : > { %v301_v0 = vld [vmem:[%s1561_s1 + $0x18] sm:$0xff]  ;;  %v300_v1 = vld [vmem:[%s1561_s1 + $0x10] sm:$0xff]  ;;  %v299_v2 = vld [vmem:[%s1561_s1 + $0x8] sm:$0xff]  ;;  %s1569_s30 = smov (!%p271_p3, %s1026_s30), 31  ;;  %vm309_vm0 = vcmask 261120   ;;  %vm534_vm1 = vcmask 523264  }
   0xc   : > { %1147 = vmatprep.subr.mxu0 %v301_v0  ;;  %1251 = vmatprep.subr.mxu1 %v301_v0  ;;  %v298_v3 = vld [vmem:[%s1561_s1] sm:$0xff]  ;;  %s1027_s12 = sshll.u32 %s1569_s30, 3  ;;  %v526_v20 = vld [vmem:[%s1563_s3 + $0x38] sm:$0xff]  ;;  %v525_v21 = vld [vmem:[%s1563_s3 + $0x30] sm:$0xff]  ;;  %vm948_vm2 = vcmask 64512  }
   0xd   : > { %1148 = vmatpush3.msra.mxu0 %v301_v0  ;;  %1255 = vmatpush3.msra.mxu1 %v301_v0  ;;  %s1407_s15 = scalar_lea.vmem %s1560_s0, %s1027_s12  ;;  %v524_v22 = vld [vmem:[%s1563_s3 + $0x28] sm:$0xff]  ;;  %v523_v23 = vld [vmem:[%s1563_s3 + $0x20] sm:$0xff]  ;;  %v522_v24 = vld [vmem:[%s1563_s3 + $0x18] sm:$0xff]  ;;  %s1523_s29 = scalar_lea.vmem %s1567_s7, %s1027_s12 }
   0xe   : > { %1149 = vmatprep.subr.mxu0 %v300_v1  ;;  %1252 = vmatprep.subr.mxu1 %v300_v1  ;;  %v282_v4 = vld [vmem:[%s1407_s15] sm:$0xff]  ;;  %v283_v5 = vld [vmem:[%s1407_s15 + $0x8] sm:$0xff]  ;;  %v284_v6 = vld [vmem:[%s1407_s15 + $0x10] sm:$0xff] }
   0xf   : > { %1150 = vmatpush3.msra.mxu0 %v300_v1  ;;  %1256 = vmatpush3.msra.mxu1 %v300_v1  ;;  %v290_v7 = vld [vmem:[%s1407_s15 + $0x40] sm:$0xff]  ;;  %v285_v8 = vld [vmem:[%s1407_s15 + $0x18] sm:$0xff]  ;;  %v291_v9 = vld [vmem:[%s1407_s15 + $0x48] sm:$0xff] }
  0x10   : > { %1151 = vmatprep.subr.mxu0 %v299_v2  ;;  %1253 = vmatprep.subr.mxu1 %v299_v2  ;;  %v292_v10 = vld [vmem:[%s1407_s15 + $0x50] sm:$0xff]  ;;  %v286_v11 = vld [vmem:[%s1407_s15 + $0x20] sm:$0xff]  ;;  %v293_v12 = vld [vmem:[%s1407_s15 + $0x58] sm:$0xff] }
  0x11   : > { %1152 = vmatpush3.msra.mxu0 %v299_v2  ;;  %1257 = vmatpush3.msra.mxu1 %v299_v2  ;;  %v294_v13 = vld [vmem:[%s1407_s15 + $0x60] sm:$0xff]  ;;  %v287_v14 = vld [vmem:[%s1407_s15 + $0x28] sm:$0xff]  ;;  %v288_v15 = vld [vmem:[%s1407_s15 + $0x30] sm:$0xff] }
  0x12   : > { %1153 = vmatprep.subr.mxu0 %v298_v3  ;;  %1254 = vmatprep.subr.mxu1 %v298_v3  ;;  %v295_v16 = vld [vmem:[%s1407_s15 + $0x68] sm:$0xff]  ;;  %v296_v17 = vld [vmem:[%s1407_s15 + $0x70] sm:$0xff]  ;;  %v289_v18 = vld [vmem:[%s1407_s15 + $0x38] sm:$0xff] }
  0x13   : > { %1154 = vmatpush3.msra.mxu0 %v298_v3  ;;  %1155 = vmatprep.mubr.msk.f32.mxu0 %vm309_vm0, %v282_v4  ;;  %v297_v19 = vld [vmem:[%s1407_s15 + $0x78] sm:$0xff]  ;;  %v521_v25 = vld [vmem:[%s1563_s3 + $0x10] sm:$0xff]  ;;  %v520_v26 = vld [vmem:[%s1563_s3 + $0x8] sm:$0xff] }
  0x14   : > { %1156 = vmatmul.mubr.msk.f32.vlgmr.msra.gmra.mxu0 %vm309_vm0, %v283_v5  ;;  %1258 = vmatpush3.msra.mxu1 %v298_v3  ;;  %v519_v27 = vld [vmem:[%s1563_s3] sm:$0xff] }
  0x15   : > { %1158 = vmatprep.mubr.msk.f32.mxu0 %vm309_vm0, %v284_v6  ;;  %1167 = vmatprep.mubr.msk.f32.mxu1 %vm309_vm0, %v290_v7  ;;  %v1030_v28 = vld [vmem:[%s1562_s2] ss:$0 sm:$0xff] }
  0x16   : > { %1168 = vmatmul.mubr.msk.f32.vlgmr.msra.gmra.mxu1 %vm309_vm0, %v291_v9  ;;  %1179 = vmatprep.subr.mxu1 %v526_v20 }
  0x17   : > { %1170 = vmatprep.mubr.msk.f32.mxu1 %vm309_vm0, %v292_v10  ;;  %1180 = vmatpush3.msra.mxu1 %v526_v20 }
  0x18   : > { %1159 = vmatmul.mubr.msk.f32.gmra.mxu0 %vm309_vm0, %v285_v8  ;;  %1181 = vmatprep.subr.mxu1 %v525_v21 }
  0x19   : > { %1161 = vmatprep.mubr.msk.f32.mxu0 %vm309_vm0, %v286_v11  ;;  %1182 = vmatpush3.msra.mxu1 %v525_v21 }
  0x1a   : > { %1171 = vmatmul.mubr.msk.f32.gmra.mxu1 %vm309_vm0, %v293_v12  ;;  %1183 = vmatprep.subr.mxu1 %v524_v22 }
  0x1b   : > { %1173 = vmatprep.mubr.msk.f32.mxu1 %vm309_vm0, %v294_v13  ;;  %1184 = vmatpush3.msra.mxu1 %v524_v22  ;;  %v747_v13 = vld [vmem:[%s1565_s5 + $0x18] sm:$0xff] }
  0x1c   : > { %1162 = vmatmul.mubr.msk.f32.gmra.mxu0 %vm309_vm0, %v287_v14  ;;  %1185 = vmatprep.subr.mxu1 %v523_v23  ;;  %v746_v14 = vld [vmem:[%s1565_s5 + $0x10] sm:$0xff] }
  0x1d   : > { %1164 = vmatprep.mubr.msk.f32.mxu0 %vm309_vm0, %v288_v15  ;;  %1186 = vmatpush3.msra.mxu1 %v523_v23  ;;  %v745_v15 = vld [vmem:[%s1565_s5 + $0x8] sm:$0xff] }
  0x1e   : > { %1174 = vmatmul.mubr.msk.f32.gmra.mxu1 %vm309_vm0, %v295_v16  ;;  %1187 = vmatprep.subr.mxu1 %v522_v24  ;;  %v744_v16 = vld [vmem:[%s1565_s5] sm:$0xff] }
  0x1f   : > { %1176 = vmatprep.mubr.msk.f32.mxu1 %vm309_vm0, %v296_v17  ;;  %1188 = vmatpush3.msra.mxu1 %v522_v24  ;;  %v1047_v17 = vld [vmem:[%s1564_s4] ss:$0 sm:$0xff] }
  0x20   : > { %1165 = vmatmul.mubr.msk.f32.gmra.mxu0 %vm309_vm0, %v289_v18  ;;  %1189 = vmatprep.subr.mxu1 %v521_v25 }
  0x21   : > { %1190 = vmatpush3.msra.mxu1 %v521_v25  ;;  %1219 = vmatprep.subr.mxu0 %v747_v13 }
  0x22   : > { %1177 = vmatmul.mubr.msk.f32.gmra.mxu1 %vm309_vm0, %v297_v19  ;;  %1191 = vmatprep.subr.mxu1 %v520_v26 }
  0x23   : > { %1192 = vmatpush3.msra.mxu1 %v520_v26  ;;  %1220 = vmatpush3.msra.mxu0 %v747_v13 }
  0x24   : > { %1193 = vmatprep.subr.mxu1 %v519_v27  ;;  %1221 = vmatprep.subr.mxu0 %v746_v14 }
  0x25   : > { %1194 = vmatpush3.msra.mxu1 %v519_v27  ;;  %1222 = vmatpush3.msra.mxu0 %v746_v14 }
  0x26   : > { %1223 = vmatprep.subr.mxu0 %v745_v15 }
  0x27   : > { %1224 = vmatpush3.msra.mxu0 %v745_v15 }
  0x28   : > { %1225 = vmatprep.subr.mxu0 %v744_v16 }
  0x29   : > { %1226 = vmatpush3.msra.mxu0 %v744_v16 }
  0xd4   : > { %v1157_v29 = vpop.f32.mrf.mxu0 }
  0xd5   : > { %v430_v30 = vadd.f32 %v1157_v29, %v1030_v28 }
  0xd6   : > { %v424_v31 = vpop.f32.mrf.mxu0  ;;  %v1169_v32 = vpop.f32.mrf.mxu1 }
  0xd7   : > { %v425_v33 = vadd.f32 %v1030_v28, %v424_v31  ;;  %v470_v54 = vadd.f32 %v1169_v32, %v1030_v28 }
  0xd8   : > { %v1160_v34 = vpop.f32.mrf.mxu0  ;;  %v464_v35 = vpop.f32.mrf.mxu1 }
  0xd9   : > { %1267 = vtanh.f32 %v425_v33  ;;  %v440_v36 = vadd.f32 %v1160_v34, %v1030_v28  ;;  %v465_v47 = vadd.f32 %v1030_v28, %v464_v35 }
  0xda   : > { %1269 = vtanh.f32 %v430_v30  ;;  %v434_v37 = vpop.f32.mrf.mxu0  ;;  %v1172_v38 = vpop.f32.mrf.mxu1 }
  0xdb   : > { %v435_v39 = vadd.f32 %v1030_v28, %v434_v37  ;;  %v480_v59 = vadd.f32 %v1172_v38, %v1030_v28 }
  0xdc   : > { %v1163_v40 = vpop.f32.mrf.mxu0  ;;  %v474_v41 = vpop.f32.mrf.mxu1 }
  0xdd   : > { %1271 = vtanh.f32 %v435_v39  ;;  %v450_v42 = vadd.f32 %v1163_v40, %v1030_v28  ;;  %v475_v52 = vadd.f32 %v1030_v28, %v474_v41 }
  0xde   : > { %1273 = vtanh.f32 %v440_v36  ;;  %v444_v43 = vpop.f32.mrf.mxu0  ;;  %v1175_v44 = vpop.f32.mrf.mxu1 }
  0xdf   : > { %v445_v45 = vadd.f32 %v1030_v28, %v444_v43  ;;  %v490_v0 = vadd.f32 %v1175_v44, %v1030_v28 }
  0xe0   : > { %v1166_v46 = vpop.f32.mrf.mxu0  ;;  %v484_v50 = vpop.f32.mrf.mxu1 }
  0xe1   : > { %1275 = vtanh.f32 %v445_v45  ;;  %v460_v48 = vadd.f32 %v1166_v46, %v1030_v28  ;;  %v485_v57 = vadd.f32 %v1030_v28, %v484_v50 }
  0xe2   : > { %1277 = vtanh.f32 %v450_v42  ;;  %v454_v49 = vpop.f32.mrf.mxu0  ;;  %v1178_v55 = vpop.f32.mrf.mxu1 }
  0xe3   : > { %v455_v51 = vadd.f32 %v1030_v28, %v454_v49  ;;  %1279 = vtanh.f32 %v465_v47  ;;  %v500_v4 = vadd.f32 %v1178_v55, %v1030_v28 }
  0xe4   : > { %v494_v60 = vpop.f32.mrf.mxu1 }
  0xe5   : > { %1281 = vtanh.f32 %v455_v51  ;;  %v495_v62 = vadd.f32 %v1030_v28, %v494_v60 }
  0xe6   : > { %v1268_v53 = vpop.eup %1267  ;;  %1283 = vtanh.f32 %v460_v48 }
  0xe7   : > { %v1270_v56 = vpop.eup %1269  ;;  %1195 = vmatprep.mubr.msk.f32.mxu1 %vm534_vm1, %v1268_v53  ;;  %1285 = vtanh.f32 %v475_v52 }
  0xe8   : > { %1196 = vmatmul.mubr.msk.f32.vlgmr.msra.gmra.mxu1 %vm534_vm1, %v1270_v56  ;;  %1287 = vtanh.f32 %v470_v54 }
  0xe9   : > { %1289 = vtanh.f32 %v485_v57 }
  0xea   : > { %v1272_v58 = vpop.eup %1271  ;;  %1291 = vtanh.f32 %v480_v59 }
  0xeb   : > { %v1274_v61 = vpop.eup %1273  ;;  %1198 = vmatprep.mubr.msk.f32.mxu1 %vm534_vm1, %v1272_v58  ;;  %1293 = vtanh.f32 %v495_v62 }
  0xec   : > { %1199 = vmatmul.mubr.msk.f32.gmra.mxu1 %vm534_vm1, %v1274_v61  ;;  %1295 = vtanh.f32 %v490_v0 }
  0xed   : > { %1297 = vtanh.f32 %v500_v4 }
  0xee   : > { %v1276_v63 = vpop.eup %1275 }
  0xef   : > { %v1278_v1 = vpop.eup %1277  ;;  %1201 = vmatprep.mubr.msk.f32.mxu1 %vm534_vm1, %v1276_v63 }
  0xf0   : > { %1202 = vmatmul.mubr.msk.f32.gmra.mxu1 %vm534_vm1, %v1278_v1  ;;  %v1280_v2 = vpop.eup %1279 }
  0xf2   : > { %v1282_v3 = vpop.eup %1281 }
  0xf3   : > { %v1284_v5 = vpop.eup %1283  ;;  %1204 = vmatprep.mubr.msk.f32.mxu1 %vm534_vm1, %v1282_v3 }
  0xf4   : > { %1205 = vmatmul.mubr.msk.f32.gmra.mxu1 %vm534_vm1, %v1284_v5  ;;  %v1286_v6 = vpop.eup %1285 }
  0xf5   : > { %1207 = vmatprep.mubr.msk.f32.mxu1 %vm534_vm1, %v1280_v2  ;;  %v1288_v7 = vpop.eup %1287  ;;  %v1064_v2 = vld [vmem:[%s1566_s6] ss:$0 sm:$0xff] }
  0xf6   : > { %v1290_v8 = vpop.eup %1289 }
  0xf7   : > { %v1292_v9 = vpop.eup %1291 }
  0xf8   : > { %1208 = vmatmul.mubr.msk.f32.gmra.mxu1 %vm534_vm1, %v1288_v7  ;;  %v1294_v10 = vpop.eup %1293 }
  0xf9   : > { %1210 = vmatprep.mubr.msk.f32.mxu1 %vm534_vm1, %v1286_v6  ;;  %v1296_v11 = vpop.eup %1295 }
  0xfa   : > { %v1298_v12 = vpop.eup %1297 }
  0xfc   : > { %1211 = vmatmul.mubr.msk.f32.gmra.mxu1 %vm534_vm1, %v1292_v9 }
  0xfd   : > { %1213 = vmatprep.mubr.msk.f32.mxu1 %vm534_vm1, %v1290_v8 }
 0x100   : > { %1214 = vmatmul.mubr.msk.f32.gmra.mxu1 %vm534_vm1, %v1296_v11 }
 0x101   : > { %1216 = vmatprep.mubr.msk.f32.mxu1 %vm534_vm1, %v1294_v10 }
 0x104   : > { %1217 = vmatmul.mubr.msk.f32.gmra.mxu1 %vm534_vm1, %v1298_v12 }
 0x1a8   : > { %v1197_v18 = vpop.f32.mrf.mxu1 }
 0x1a9   : > { %v655_v19 = vadd.f32 %v1197_v18, %v1047_v17 }
 0x1aa   : > { %v649_v20 = vpop.f32.mrf.mxu1 }
 0x1ab   : > { %v650_v21 = vadd.f32 %v1047_v17, %v649_v20 }
 0x1ac   : > { %v1200_v22 = vpop.f32.mrf.mxu1 }
 0x1ad   : > { %1299 = vtanh.f32 %v650_v21  ;;  %v665_v23 = vadd.f32 %v1200_v22, %v1047_v17 }
 0x1ae   : > { %1301 = vtanh.f32 %v655_v19  ;;  %v659_v24 = vpop.f32.mrf.mxu1 }
 0x1af   : > { %v660_v25 = vadd.f32 %v1047_v17, %v659_v24 }
 0x1b0   : > { %v1203_v26 = vpop.f32.mrf.mxu1 }
 0x1b1   : > { %1303 = vtanh.f32 %v660_v25  ;;  %v675_v27 = vadd.f32 %v1203_v26, %v1047_v17 }
 0x1b2   : > { %1305 = vtanh.f32 %v665_v23  ;;  %v669_v28 = vpop.f32.mrf.mxu1 }
 0x1b3   : > { %v670_v29 = vadd.f32 %v1047_v17, %v669_v28 }
 0x1b4   : > { %v1206_v30 = vpop.f32.mrf.mxu1 }
 0x1b5   : > { %1307 = vtanh.f32 %v670_v29  ;;  %v685_v31 = vadd.f32 %v1206_v30, %v1047_v17 }
 0x1b6   : > { %1309 = vtanh.f32 %v675_v27  ;;  %v679_v32 = vpop.f32.mrf.mxu1 }
 0x1b7   : > { %v680_v33 = vadd.f32 %v1047_v17, %v679_v32 }
 0x1b8   : > { %v1209_v34 = vpop.f32.mrf.mxu1 }
 0x1b9   : > { %1311 = vtanh.f32 %v680_v33  ;;  %v695_v36 = vadd.f32 %v1209_v34, %v1047_v17 }
 0x1ba   : > { %v1300_v35 = vpop.eup %1299  ;;  %1313 = vtanh.f32 %v685_v31  ;;  %v689_v37 = vpop.f32.mrf.mxu1 }
 0x1bb   : > { %v1302_v38 = vpop.eup %1301  ;;  %v690_v39 = vadd.f32 %v1047_v17, %v689_v37  ;;  %1227 = vmatprep.mubr.msk.f32.mxu0 %vm309_vm0, %v1300_v35 }
 0x1bc   : > { %v1212_v40 = vpop.f32.mrf.mxu1  ;;  %1228 = vmatmul.mubr.msk.f32.vlgmr.msra.gmra.mxu0 %vm309_vm0, %v1302_v38 }
 0x1bd   : > { %1315 = vtanh.f32 %v690_v39  ;;  %v705_v42 = vadd.f32 %v1212_v40, %v1047_v17 }
 0x1be   : > { %v1304_v41 = vpop.eup %1303  ;;  %1317 = vtanh.f32 %v695_v36  ;;  %v699_v43 = vpop.f32.mrf.mxu1 }
 0x1bf   : > { %v1306_v44 = vpop.eup %1305  ;;  %v700_v45 = vadd.f32 %v1047_v17, %v699_v43  ;;  %1230 = vmatprep.mubr.msk.f32.mxu0 %vm309_vm0, %v1304_v41 }
 0x1c0   : > { %v1215_v46 = vpop.f32.mrf.mxu1  ;;  %1231 = vmatmul.mubr.msk.f32.gmra.mxu0 %vm309_vm0, %v1306_v44 }
 0x1c1   : > { %1319 = vtanh.f32 %v700_v45  ;;  %v715_v48 = vadd.f32 %v1215_v46, %v1047_v17 }
 0x1c2   : > { %v1308_v47 = vpop.eup %1307  ;;  %1321 = vtanh.f32 %v705_v42  ;;  %v709_v49 = vpop.f32.mrf.mxu1 }
 0x1c3   : > { %v1310_v50 = vpop.eup %1309  ;;  %v710_v51 = vadd.f32 %v1047_v17, %v709_v49  ;;  %1233 = vmatprep.mubr.msk.f32.mxu0 %vm309_vm0, %v1308_v47 }
 0x1c4   : > { %v1218_v52 = vpop.f32.mrf.mxu1  ;;  %1234 = vmatmul.mubr.msk.f32.gmra.mxu0 %vm309_vm0, %v1310_v50 }
 0x1c5   : > { %1323 = vtanh.f32 %v710_v51  ;;  %v725_v54 = vadd.f32 %v1218_v52, %v1047_v17 }
 0x1c6   : > { %v1312_v53 = vpop.eup %1311  ;;  %1325 = vtanh.f32 %v715_v48  ;;  %v719_v55 = vpop.f32.mrf.mxu1 }
 0x1c7   : > { %v1314_v56 = vpop.eup %1313  ;;  %v720_v57 = vadd.f32 %v1047_v17, %v719_v55  ;;  %1236 = vmatprep.mubr.msk.f32.mxu0 %vm309_vm0, %v1312_v53 }
 0x1c8   : > { %1237 = vmatmul.mubr.msk.f32.gmra.mxu0 %vm309_vm0, %v1314_v56 }
 0x1c9   : > { %1327 = vtanh.f32 %v720_v57 }
 0x1ca   : > { %v1316_v58 = vpop.eup %1315  ;;  %1329 = vtanh.f32 %v725_v54 }
 0x1cb   : > { %v1318_v59 = vpop.eup %1317  ;;  %1239 = vmatprep.mubr.msk.f32.mxu0 %vm309_vm0, %v1316_v58 }
 0x1cc   : > { %1240 = vmatmul.mubr.msk.f32.gmra.mxu0 %vm309_vm0, %v1318_v59 }
 0x1ce   : > { %v1320_v60 = vpop.eup %1319 }
 0x1cf   : > { %v1322_v61 = vpop.eup %1321  ;;  %1242 = vmatprep.mubr.msk.f32.mxu0 %vm309_vm0, %v1320_v60 }
 0x1d0   : > { %1243 = vmatmul.mubr.msk.f32.gmra.mxu0 %vm309_vm0, %v1322_v61 }
 0x1d2   : > { %v1324_v62 = vpop.eup %1323 }
 0x1d3   : > { %v1326_v63 = vpop.eup %1325  ;;  %1245 = vmatprep.mubr.msk.f32.mxu0 %vm309_vm0, %v1324_v62 }
 0x1d4   : > { %1246 = vmatmul.mubr.msk.f32.gmra.mxu0 %vm309_vm0, %v1326_v63 }
 0x1d6   : > { %v1328_v0 = vpop.eup %1327 }
 0x1d7   : > { %v1330_v1 = vpop.eup %1329  ;;  %1248 = vmatprep.mubr.msk.f32.mxu0 %vm309_vm0, %v1328_v0 }
 0x1d8   : > { %1249 = vmatmul.mubr.msk.f32.gmra.mxu0 %vm309_vm0, %v1330_v1 }
 0x27c   : > { %v1229_v3 = vpop.f32.mrf.mxu0 }
 0x27d   : > { %v875_v4 = vadd.f32 %v1229_v3, %v1064_v2 }
 0x27e   : > { %v869_v5 = vpop.f32.mrf.mxu0 }
 0x27f   : > { %950 = vst.msk [vmem:[%s1523_s29 + $0x8] sm:$0xff] %vm948_vm2, %v875_v4  ;;  %v870_v6 = vadd.f32 %v1064_v2, %v869_v5 }
 0x280   : > { %v1232_v7 = vpop.f32.mrf.mxu0 }
 0x281   : > { %949 = vst.msk [vmem:[%s1523_s29] sm:$0xff] %vm948_vm2, %v870_v6  ;;  %v885_v8 = vadd.f32 %v1232_v7, %v1064_v2 }
 0x282   : > { %v879_v9 = vpop.f32.mrf.mxu0 }
 0x283   : > { %952 = vst.msk [vmem:[%s1523_s29 + $0x18] sm:$0xff] %vm948_vm2, %v885_v8  ;;  %v880_v10 = vadd.f32 %v1064_v2, %v879_v9 }
 0x284   : > { %v1235_v11 = vpop.f32.mrf.mxu0 }
 0x285   : > { %951 = vst.msk [vmem:[%s1523_s29 + $0x10] sm:$0xff] %vm948_vm2, %v880_v10  ;;  %v895_v12 = vadd.f32 %v1235_v11, %v1064_v2 }
 0x286   : > { %v889_v13 = vpop.f32.mrf.mxu0 }
 0x287   : > { %954 = vst.msk [vmem:[%s1523_s29 + $0x28] sm:$0xff] %vm948_vm2, %v895_v12  ;;  %v890_v14 = vadd.f32 %v1064_v2, %v889_v13 }
 0x288   : > { %v1238_v15 = vpop.f32.mrf.mxu0 }
 0x289   : > { %953 = vst.msk [vmem:[%s1523_s29 + $0x20] sm:$0xff] %vm948_vm2, %v890_v14  ;;  %v905_v16 = vadd.f32 %v1238_v15, %v1064_v2 }
 0x28a   : > { %v899_v17 = vpop.f32.mrf.mxu0 }
 0x28b   : > { %956 = vst.msk [vmem:[%s1523_s29 + $0x38] sm:$0xff] %vm948_vm2, %v905_v16  ;;  %v900_v18 = vadd.f32 %v1064_v2, %v899_v17 }
 0x28c   : > { %v1241_v19 = vpop.f32.mrf.mxu0 }
 0x28d   : > { %955 = vst.msk [vmem:[%s1523_s29 + $0x30] sm:$0xff] %vm948_vm2, %v900_v18  ;;  %v915_v20 = vadd.f32 %v1241_v19, %v1064_v2 }
 0x28e   : > { %v909_v21 = vpop.f32.mrf.mxu0 }
 0x28f   : > { %958 = vst.msk [vmem:[%s1523_s29 + $0x48] sm:$0xff] %vm948_vm2, %v915_v20  ;;  %v910_v22 = vadd.f32 %v1064_v2, %v909_v21 }
 0x290   : > { %v1244_v23 = vpop.f32.mrf.mxu0 }
 0x291   : > { %957 = vst.msk [vmem:[%s1523_s29 + $0x40] sm:$0xff] %vm948_vm2, %v910_v22  ;;  %v925_v24 = vadd.f32 %v1244_v23, %v1064_v2 }
 0x292   : > { %v919_v25 = vpop.f32.mrf.mxu0 }
 0x293   : > { %960 = vst.msk [vmem:[%s1523_s29 + $0x58] sm:$0xff] %vm948_vm2, %v925_v24  ;;  %v920_v26 = vadd.f32 %v1064_v2, %v919_v25 }
 0x294   : > { %v1247_v27 = vpop.f32.mrf.mxu0 }
 0x295   : > { %959 = vst.msk [vmem:[%s1523_s29 + $0x50] sm:$0xff] %vm948_vm2, %v920_v26  ;;  %v935_v28 = vadd.f32 %v1247_v27, %v1064_v2 }
 0x296   : > { %v929_v29 = vpop.f32.mrf.mxu0 }
 0x297   : > { %962 = vst.msk [vmem:[%s1523_s29 + $0x68] sm:$0xff] %vm948_vm2, %v935_v28  ;;  %v930_v30 = vadd.f32 %v1064_v2, %v929_v29 }
 0x298   : > { %v1250_v31 = vpop.f32.mrf.mxu0 }
 0x299   : > { %961 = vst.msk [vmem:[%s1523_s29 + $0x60] sm:$0xff] %vm948_vm2, %v930_v30  ;;  %v945_v32 = vadd.f32 %v1250_v31, %v1064_v2 }
 0x29a   : > { %v939_v33 = vpop.f32.mrf.mxu0 }
 0x29b   : > { %964 = vst.msk [vmem:[%s1523_s29 + $0x78] sm:$0xff] %vm948_vm2, %v945_v32  ;;  %v940_v34 = vadd.f32 %v1064_v2, %v939_v33 }
 0x29d   : > { %963 = vst.msk [vmem:[%s1523_s29 + $0x70] sm:$0xff] %vm948_vm2, %v940_v34 }
 0x29e PF: > { %s17_s24 = sadd.s32 1, %s1337_s24  }
 0x29f   : > { %p14_p4 = scmp.ge.s32.totalorder %s17_s24, 4  }
 0x2a1   :  { %16 = sbr.rel (!%p14_p4) target bundleno = 1 (0x1), region = 78 }

</bundles_post_ra>
